<compile_context>
chip_gen: v7x
topology: tpu7x:2x2x1
jax: 0.10.0
libtpu: 0.0.40
codegen_flags: <defaults>
</compile_context>

<pallas_src>
import jax
import jax.numpy as jnp
from jax import lax
from jax.experimental import pallas as pl
from jax.experimental.pallas import tpu as pltpu


def _align8(n):
    return (n + 7) & ~7


def pack_params(params):
    """One-time packing of the 8 small parameter arrays into 2 dense operands."""
    emb = params["embedding"]          # (V, E)
    wih = params["wih_t"]              # (E, H)   = W_ih^T
    whh = params["whh_t"]              # (H, H)   = W_hh^T
    w1 = params["w1_t"]                # (H, H)   = Linear1 weight^T
    w2 = params["w2_t"]                # (H, Hd)  = Linear2 weight^T
    brnn, b1, b2 = params["brnn"], params["b1"], params["b2"]

    V, E = emb.shape
    H = whh.shape[0]
    Hd = w2.shape[1]
    W = max(E, H, Hd)                  # common (padded) lane width

    mats = [emb, wih, whh, w1, w2]
    offs, r = [], 0
    for m in mats:
        offs.append(r)
        r += _align8(m.shape[0])       # 8-sublane-aligned segment starts
    rtot = _align8(r)

    wpack = jnp.zeros((rtot, W), jnp.float32)
    for off, m in zip(offs, mats):
        wpack = wpack.at[off:off + m.shape[0], :m.shape[1]].set(m)

    bpack = jnp.zeros((3, W), jnp.float32)
    bpack = bpack.at[0, :H].set(brnn[0])   # b_ih + b_hh
    bpack = bpack.at[1, :H].set(b1[0])
    bpack = bpack.at[2, :Hd].set(b2[0])

    meta = dict(V=V, E=E, H=H, Hd=Hd, W=W, rtot=rtot,
                o_emb=offs[0], o_wih=offs[1], o_whh=offs[2],
                o_w1=offs[3], o_w2=offs[4])
    return dict(wpack=wpack, bpack=bpack, meta=meta)


def encoder_forward(tokens, packed):
    """tokens: (N, T) int32.  Returns (output (N, T, H), hidden (1, N, Hd))."""
    meta = packed["meta"]
    V, E, H, Hd, W = meta["V"], meta["E"], meta["H"], meta["Hd"], meta["W"]
    o_emb, o_wih, o_whh = meta["o_emb"], meta["o_wih"], meta["o_whh"]
    o_w1, o_w2, rtot = meta["o_w1"], meta["o_w2"], meta["rtot"]
    N, T = tokens.shape

    def kernel(tok_ref, wpack_ref, bpack_ref, out_ref, hid_ref,
               embproj_ref, xw_ref):
        # --- Static (zero-cost) views of the packed parameters. ---
        emb = wpack_ref[o_emb:o_emb + V, :E]     # (V, E)
        wih = wpack_ref[o_wih:o_wih + E, :H]     # (E, H)
        whh = wpack_ref[o_whh:o_whh + H, :H]     # (H, H)  -- hoisted, loop-resident
        w1 = wpack_ref[o_w1:o_w1 + H, :H]        # (H, H)
        w2 = wpack_ref[o_w2:o_w2 + H, :Hd]       # (H, Hd)
        brnn = bpack_ref[0:1, :H]                # (1, H)
        b1 = bpack_ref[1:2, :H]                  # (1, H)
        b2 = bpack_ref[2:3, :Hd]                 # (1, Hd)

        # --- Preamble: project the WHOLE embedding table through W_ih once. ---
        # emb_proj[v] = emb[v] @ W_ih^T + (b_ih + b_hh)   -- one MXU matmul.
        embproj_ref[...] = (
            jnp.dot(emb, wih, preferred_element_type=jnp.float32) + brnn)

        # --- Fused embedding lookup: xw[t, n] = emb_proj[tokens[n, t]]. ---
        # Dropout is identity at inference.
        # TODO(synk): training-mode dropout would use pltpu.prng_random_bits here.
        for t in range(T):
            for n in range(N):
                xw_ref[t, n:n + 1, :] = embproj_ref[pl.ds(tok_ref[n, t], 1), :]

        # --- Sequential recurrence: only h @ W_hh^T is on the critical path. ---
        # Static Python loop => constant, tile-aligned per-step addresses.
        h = jnp.zeros((N, H), jnp.float32)
        for t in range(T):
            h = jnp.tanh(
                xw_ref[t] + jnp.dot(h, whh, preferred_element_type=jnp.float32))
            out_ref[:, t, :] = h.astype(out_ref.dtype)   # batch-first store

        # --- Epilogue: hidden = tanh(L2(relu(L1(h_T)))), emitted as (1, N, Hd). ---
        z1 = jnp.maximum(
            jnp.dot(h, w1, preferred_element_type=jnp.float32) + b1, 0.0)
        hid_ref[0] = jnp.tanh(
            jnp.dot(z1, w2, preferred_element_type=jnp.float32) + b2
        ).astype(hid_ref.dtype)

    grid_spec = pltpu.PrefetchScalarGridSpec(
        num_scalar_prefetch=1,                       # tokens -> SMEM
        grid=(1,),                                   # single invocation
        in_specs=[
            pl.BlockSpec((rtot, W), lambda i, tok: (0, 0)),   # packed weights
            pl.BlockSpec((3, W), lambda i, tok: (0, 0)),      # packed biases
        ],
        out_specs=[
            pl.BlockSpec((N, T, H), lambda i, tok: (0, 0, 0)),    # output seq
            pl.BlockSpec((1, N, Hd), lambda i, tok: (0, 0, 0)),   # final hidden
        ],
        scratch_shapes=[
            pltpu.VMEM((V, H), jnp.float32),     # pre-projected embedding table
            pltpu.VMEM((T, N, H), jnp.float32),  # per-step input projections
        ],
    )

    output, hidden = pl.pallas_call(
        kernel,
        out_shape=(
            jax.ShapeDtypeStruct((N, T, H), jnp.float32),
            jax.ShapeDtypeStruct((1, N, Hd), jnp.float32),
        ),
        grid_spec=grid_spec,
        compiler_params=pltpu.CompilerParams(
            dimension_semantics=("arbitrary",)),
    )(tokens, packed["wpack"], packed["bpack"])
    return output, hidden


def _encoder_reference(tokens, params):
    """Pure-JAX reference for correctness checking."""
    emb = jnp.take(params["embedding"], tokens, axis=0)          # (N, T, E)
    N, T, _ = emb.shape
    H = params["whh_t"].shape[0]

    def step(h, x_t):
        h_new = jnp.tanh(x_t @ params["wih_t"] + h @ params["whh_t"]
                         + params["brnn"])
        return h_new, h_new

    h0 = jnp.zeros((N, H), jnp.float32)
    h_last, outs = lax.scan(step, h0, jnp.transpose(emb, (1, 0, 2)))
    output = jnp.transpose(outs, (1, 0, 2))                      # (N, T, H)
    z1 = jnp.maximum(h_last @ params["w1_t"] + params["b1"], 0.0)
    hidden = jnp.tanh(z1 @ params["w2_t"] + params["b2"])[None]  # (1, N, Hd)
    return output, hidden


def init_params(key, input_size, emb_size, enc_hidden, dec_hidden):
    ks = jax.random.split(key, 8)
    scale = 0.1
    return {
        "embedding": scale * jax.random.normal(ks[0], (input_size, emb_size), jnp.float32),
        # nn.RNN weights W_ih:(H,E), W_hh:(H,H) stored transposed.
        "wih_t": scale * jax.random.normal(ks[1], (emb_size, enc_hidden), jnp.float32),
        "whh_t": scale * jax.random.normal(ks[2], (enc_hidden, enc_hidden), jnp.float32),
        "brnn": scale * jax.random.normal(ks[3], (1, enc_hidden), jnp.float32),  # b_ih + b_hh
        # Linear1: (H,H), Linear2: (Hd,H) stored transposed.
        "w1_t": scale * jax.random.normal(ks[4], (enc_hidden, enc_hidden), jnp.float32),
        "b1": scale * jax.random.normal(ks[5], (1, enc_hidden), jnp.float32),
        "w2_t": scale * jax.random.normal(ks[6], (enc_hidden, dec_hidden), jnp.float32),
        "b2": scale * jax.random.normal(ks[7], (1, dec_hidden), jnp.float32),
    }


if __name__ == "__main__":
    # Small shapes consistent with the module: batch=2, seq=8, vocab=20,
    # emb=32, encoder_hidden=32, decoder_hidden=32.
    N, T = 2, 8
    VOCAB, EMB, H_ENC, H_DEC = 20, 32, 32, 32

    key = jax.random.PRNGKey(0)
    pkey, tkey = jax.random.split(key)
    params = init_params(pkey, VOCAB, EMB, H_ENC, H_DEC)
    packed = pack_params(params)          # one-time setup, outside the call path
    tokens = jax.random.randint(tkey, (N, T), 0, VOCAB, dtype=jnp.int32)

    output, hidden = encoder_forward(tokens, packed)
    jax.block_until_ready((output, hidden))

    assert output.shape == (N, T, H_ENC)
    assert hidden.shape == (1, N, H_DEC)

    # Sanity check against a pure-JAX reference (loose tolerance for MXU f32 path).
    ref_out, ref_hid = _encoder_reference(tokens, params)
    assert jnp.allclose(output, ref_out, atol=2e-3, rtol=2e-3)
    assert jnp.allclose(hidden, ref_hid, atol=2e-3, rtol=2e-3)

    print("KERNEL_OK")
</pallas_src>

<mosaic_0001>
module attributes {stable_mosaic.version = 11 : i64} {
  func.func @kernel(%arg0: i32, %arg1: memref<2x8xi32, #tpu.memory_space<smem>>, %arg2: memref<152x32xf32, #tpu.memory_space<vmem>>, %arg3: memref<3x32xf32, #tpu.memory_space<vmem>>, %arg4: memref<2x8x32xf32, #tpu.memory_space<vmem>>, %arg5: memref<1x2x32xf32, #tpu.memory_space<vmem>>, %arg6: memref<20x32xf32, #tpu.memory_space<vmem>>, %arg7: memref<8x2x32xf32, #tpu.memory_space<vmem>>) attributes {dimension_semantics = [#tpu.dimension_semantics<arbitrary>], iteration_bounds = array<i64: 1>, scalar_prefetch = 1 : i64, scratch_operands = 2 : i64, tpu.core_type = #tpu.core_type<tc>, window_params = [{pipeline_mode = #tpu.pipeline_mode<synchronous>, transform_indices = @transform_0, window_bounds = array<i64: 152, 32>}, {pipeline_mode = #tpu.pipeline_mode<synchronous>, transform_indices = @transform_1, window_bounds = array<i64: 3, 32>}, {pipeline_mode = #tpu.pipeline_mode<synchronous>, transform_indices = @transform_2, window_bounds = array<i64: 2, 8, 32>}, {pipeline_mode = #tpu.pipeline_mode<synchronous>, transform_indices = @transform_3, window_bounds = array<i64: 1, 2, 32>}]} {
    %c0 = arith.constant 0 : index
    %c0_0 = arith.constant 0 : index
    %0 = vector.load %arg2[%c0, %c0_0] : memref<152x32xf32, #tpu.memory_space<vmem>>, vector<20x32xf32>
    %c24 = arith.constant 24 : index
    %c0_1 = arith.constant 0 : index
    %1 = vector.load %arg2[%c24, %c0_1] : memref<152x32xf32, #tpu.memory_space<vmem>>, vector<32x32xf32>
    %c56 = arith.constant 56 : index
    %c0_2 = arith.constant 0 : index
    %2 = vector.load %arg2[%c56, %c0_2] : memref<152x32xf32, #tpu.memory_space<vmem>>, vector<32x32xf32>
    %c88 = arith.constant 88 : index
    %c0_3 = arith.constant 0 : index
    %3 = vector.load %arg2[%c88, %c0_3] : memref<152x32xf32, #tpu.memory_space<vmem>>, vector<32x32xf32>
    %c120 = arith.constant 120 : index
    %c0_4 = arith.constant 0 : index
    %4 = vector.load %arg2[%c120, %c0_4] : memref<152x32xf32, #tpu.memory_space<vmem>>, vector<32x32xf32>
    %c0_5 = arith.constant 0 : index
    %c0_6 = arith.constant 0 : index
    %5 = vector.load %arg3[%c0_5, %c0_6] : memref<3x32xf32, #tpu.memory_space<vmem>>, vector<1x32xf32>
    %c1 = arith.constant 1 : index
    %c0_7 = arith.constant 0 : index
    %6 = vector.load %arg3[%c1, %c0_7] : memref<3x32xf32, #tpu.memory_space<vmem>>, vector<1x32xf32>
    %c2 = arith.constant 2 : index
    %c0_8 = arith.constant 0 : index
    %7 = vector.load %arg3[%c2, %c0_8] : memref<3x32xf32, #tpu.memory_space<vmem>>, vector<1x32xf32>
    %cst = arith.constant dense<0.000000e+00> : vector<20x32xf32>
    %8 = tpu.matmul %0, %1, %cst {dimension_numbers = #tpu.dot_dimension_numbers<[1], [0], [0], [1], [0, 0, 1, 1], [], []>} : vector<20x32xf32>, vector<32x32xf32>, vector<20x32xf32> -> vector<20x32xf32>
    %9 = vector.broadcast %5 : vector<1x32xf32> to vector<20x32xf32>
    %10 = arith.addf %8, %9 : vector<20x32xf32>
    %c0_9 = arith.constant 0 : index
    %c0_10 = arith.constant 0 : index
    %11 = vector.load %arg6[%c0_9, %c0_10] : memref<20x32xf32, #tpu.memory_space<vmem>>, vector<20x32xf32>
    tpu.vector_store %arg6[%c0_9, %c0_10], %10 {strides = array<i32>} : memref<20x32xf32, #tpu.memory_space<vmem>>, vector<20x32xf32>,
    %c0_11 = arith.constant 0 : index
    %c0_12 = arith.constant 0 : index
    %12 = memref.load %arg1[%c0_11, %c0_12] : memref<2x8xi32, #tpu.memory_space<smem>>
    %13 = arith.index_cast %12 : i32 to index
    %c0_13 = arith.constant 0 : index
    %14 = vector.load %arg6[%13, %c0_13] : memref<20x32xf32, #tpu.memory_space<vmem>>, vector<1x32xf32>
    %c0_14 = arith.constant 0 : index
    %c0_15 = arith.constant 0 : index
    %c0_16 = arith.constant 0 : index
    %15 = vector.load %arg7[%c0_14, %c0_15, %c0_16] : memref<8x2x32xf32, #tpu.memory_space<vmem>>, vector<1x1x32xf32>
    %16 = vector.shape_cast %15 : vector<1x1x32xf32> to vector<1x32xf32>
    %17 = vector.shape_cast %14 : vector<1x32xf32> to vector<1x1x32xf32>
    tpu.vector_store %arg7[%c0_14, %c0_15, %c0_16], %17 {strides = array<i32>} : memref<8x2x32xf32, #tpu.memory_space<vmem>>, vector<1x1x32xf32>,
    %c1_17 = arith.constant 1 : index
    %c0_18 = arith.constant 0 : index
    %18 = memref.load %arg1[%c1_17, %c0_18] : memref<2x8xi32, #tpu.memory_space<smem>>
    %19 = arith.index_cast %18 : i32 to index
    %c0_19 = arith.constant 0 : index
    %20 = vector.load %arg6[%19, %c0_19] : memref<20x32xf32, #tpu.memory_space<vmem>>, vector<1x32xf32>
    %c0_20 = arith.constant 0 : index
    %c1_21 = arith.constant 1 : index
    %c0_22 = arith.constant 0 : index
    %21 = vector.load %arg7[%c0_20, %c1_21, %c0_22] : memref<8x2x32xf32, #tpu.memory_space<vmem>>, vector<1x1x32xf32>
    %22 = vector.shape_cast %21 : vector<1x1x32xf32> to vector<1x32xf32>
    %23 = vector.shape_cast %20 : vector<1x32xf32> to vector<1x1x32xf32>
    tpu.vector_store %arg7[%c0_20, %c1_21, %c0_22], %23 {strides = array<i32>} : memref<8x2x32xf32, #tpu.memory_space<vmem>>, vector<1x1x32xf32>,
    %c0_23 = arith.constant 0 : index
    %c1_24 = arith.constant 1 : index
    %24 = memref.load %arg1[%c0_23, %c1_24] : memref<2x8xi32, #tpu.memory_space<smem>>
    %25 = arith.index_cast %24 : i32 to index
    %c0_25 = arith.constant 0 : index
    %26 = vector.load %arg6[%25, %c0_25] : memref<20x32xf32, #tpu.memory_space<vmem>>, vector<1x32xf32>
    %c1_26 = arith.constant 1 : index
    %c0_27 = arith.constant 0 : index
    %c0_28 = arith.constant 0 : index
    %27 = vector.load %arg7[%c1_26, %c0_27, %c0_28] : memref<8x2x32xf32, #tpu.memory_space<vmem>>, vector<1x1x32xf32>
    %28 = vector.shape_cast %27 : vector<1x1x32xf32> to vector<1x32xf32>
    %29 = vector.shape_cast %26 : vector<1x32xf32> to vector<1x1x32xf32>
    tpu.vector_store %arg7[%c1_26, %c0_27, %c0_28], %29 {strides = array<i32>} : memref<8x2x32xf32, #tpu.memory_space<vmem>>, vector<1x1x32xf32>,
    %c1_29 = arith.constant 1 : index
    %c1_30 = arith.constant 1 : index
    %30 = memref.load %arg1[%c1_29, %c1_30] : memref<2x8xi32, #tpu.memory_space<smem>>
    %31 = arith.index_cast %30 : i32 to index
    %c0_31 = arith.constant 0 : index
    %32 = vector.load %arg6[%31, %c0_31] : memref<20x32xf32, #tpu.memory_space<vmem>>, vector<1x32xf32>
    %c1_32 = arith.constant 1 : index
    %c1_33 = arith.constant 1 : index
    %c0_34 = arith.constant 0 : index
    %33 = vector.load %arg7[%c1_32, %c1_33, %c0_34] : memref<8x2x32xf32, #tpu.memory_space<vmem>>, vector<1x1x32xf32>
    %34 = vector.shape_cast %33 : vector<1x1x32xf32> to vector<1x32xf32>
    %35 = vector.shape_cast %32 : vector<1x32xf32> to vector<1x1x32xf32>
    tpu.vector_store %arg7[%c1_32, %c1_33, %c0_34], %35 {strides = array<i32>} : memref<8x2x32xf32, #tpu.memory_space<vmem>>, vector<1x1x32xf32>,
    %c0_35 = arith.constant 0 : index
    %c2_36 = arith.constant 2 : index
    %36 = memref.load %arg1[%c0_35, %c2_36] : memref<2x8xi32, #tpu.memory_space<smem>>
    %37 = arith.index_cast %36 : i32 to index
    %c0_37 = arith.constant 0 : index
    %38 = vector.load %arg6[%37, %c0_37] : memref<20x32xf32, #tpu.memory_space<vmem>>, vector<1x32xf32>
    %c2_38 = arith.constant 2 : index
    %c0_39 = arith.constant 0 : index
    %c0_40 = arith.constant 0 : index
    %39 = vector.load %arg7[%c2_38, %c0_39, %c0_40] : memref<8x2x32xf32, #tpu.memory_space<vmem>>, vector<1x1x32xf32>
    %40 = vector.shape_cast %39 : vector<1x1x32xf32> to vector<1x32xf32>
    %41 = vector.shape_cast %38 : vector<1x32xf32> to vector<1x1x32xf32>
    tpu.vector_store %arg7[%c2_38, %c0_39, %c0_40], %41 {strides = array<i32>} : memref<8x2x32xf32, #tpu.memory_space<vmem>>, vector<1x1x32xf32>,
    %c1_41 = arith.constant 1 : index
    %c2_42 = arith.constant 2 : index
    %42 = memref.load %arg1[%c1_41, %c2_42] : memref<2x8xi32, #tpu.memory_space<smem>>
    %43 = arith.index_cast %42 : i32 to index
    %c0_43 = arith.constant 0 : index
    %44 = vector.load %arg6[%43, %c0_43] : memref<20x32xf32, #tpu.memory_space<vmem>>, vector<1x32xf32>
    %c2_44 = arith.constant 2 : index
    %c1_45 = arith.constant 1 : index
    %c0_46 = arith.constant 0 : index
    %45 = vector.load %arg7[%c2_44, %c1_45, %c0_46] : memref<8x2x32xf32, #tpu.memory_space<vmem>>, vector<1x1x32xf32>
    %46 = vector.shape_cast %45 : vector<1x1x32xf32> to vector<1x32xf32>
    %47 = vector.shape_cast %44 : vector<1x32xf32> to vector<1x1x32xf32>
    tpu.vector_store %arg7[%c2_44, %c1_45, %c0_46], %47 {strides = array<i32>} : memref<8x2x32xf32, #tpu.memory_space<vmem>>, vector<1x1x32xf32>,
    %c0_47 = arith.constant 0 : index
    %c3 = arith.constant 3 : index
    %48 = memref.load %arg1[%c0_47, %c3] : memref<2x8xi32, #tpu.memory_space<smem>>
    %49 = arith.index_cast %48 : i32 to index
    %c0_48 = arith.constant 0 : index
    %50 = vector.load %arg6[%49, %c0_48] : memref<20x32xf32, #tpu.memory_space<vmem>>, vector<1x32xf32>
    %c3_49 = arith.constant 3 : index
    %c0_50 = arith.constant 0 : index
    %c0_51 = arith.constant 0 : index
    %51 = vector.load %arg7[%c3_49, %c0_50, %c0_51] : memref<8x2x32xf32, #tpu.memory_space<vmem>>, vector<1x1x32xf32>
    %52 = vector.shape_cast %51 : vector<1x1x32xf32> to vector<1x32xf32>
    %53 = vector.shape_cast %50 : vector<1x32xf32> to vector<1x1x32xf32>
    tpu.vector_store %arg7[%c3_49, %c0_50, %c0_51], %53 {strides = array<i32>} : memref<8x2x32xf32, #tpu.memory_space<vmem>>, vector<1x1x32xf32>,
    %c1_52 = arith.constant 1 : index
    %c3_53 = arith.constant 3 : index
    %54 = memref.load %arg1[%c1_52, %c3_53] : memref<2x8xi32, #tpu.memory_space<smem>>
    %55 = arith.index_cast %54 : i32 to index
    %c0_54 = arith.constant 0 : index
    %56 = vector.load %arg6[%55, %c0_54] : memref<20x32xf32, #tpu.memory_space<vmem>>, vector<1x32xf32>
    %c3_55 = arith.constant 3 : index
    %c1_56 = arith.constant 1 : index
    %c0_57 = arith.constant 0 : index
    %57 = vector.load %arg7[%c3_55, %c1_56, %c0_57] : memref<8x2x32xf32, #tpu.memory_space<vmem>>, vector<1x1x32xf32>
    %58 = vector.shape_cast %57 : vector<1x1x32xf32> to vector<1x32xf32>
    %59 = vector.shape_cast %56 : vector<1x32xf32> to vector<1x1x32xf32>
    tpu.vector_store %arg7[%c3_55, %c1_56, %c0_57], %59 {strides = array<i32>} : memref<8x2x32xf32, #tpu.memory_space<vmem>>, vector<1x1x32xf32>,
    %c0_58 = arith.constant 0 : index
    %c4 = arith.constant 4 : index
    %60 = memref.load %arg1[%c0_58, %c4] : memref<2x8xi32, #tpu.memory_space<smem>>
    %61 = arith.index_cast %60 : i32 to index
    %c0_59 = arith.constant 0 : index
    %62 = vector.load %arg6[%61, %c0_59] : memref<20x32xf32, #tpu.memory_space<vmem>>, vector<1x32xf32>
    %c4_60 = arith.constant 4 : index
    %c0_61 = arith.constant 0 : index
    %c0_62 = arith.constant 0 : index
    %63 = vector.load %arg7[%c4_60, %c0_61, %c0_62] : memref<8x2x32xf32, #tpu.memory_space<vmem>>, vector<1x1x32xf32>
    %64 = vector.shape_cast %63 : vector<1x1x32xf32> to vector<1x32xf32>
    %65 = vector.shape_cast %62 : vector<1x32xf32> to vector<1x1x32xf32>
    tpu.vector_store %arg7[%c4_60, %c0_61, %c0_62], %65 {strides = array<i32>} : memref<8x2x32xf32, #tpu.memory_space<vmem>>, vector<1x1x32xf32>,
    %c1_63 = arith.constant 1 : index
    %c4_64 = arith.constant 4 : index
    %66 = memref.load %arg1[%c1_63, %c4_64] : memref<2x8xi32, #tpu.memory_space<smem>>
    %67 = arith.index_cast %66 : i32 to index
    %c0_65 = arith.constant 0 : index
    %68 = vector.load %arg6[%67, %c0_65] : memref<20x32xf32, #tpu.memory_space<vmem>>, vector<1x32xf32>
    %c4_66 = arith.constant 4 : index
    %c1_67 = arith.constant 1 : index
    %c0_68 = arith.constant 0 : index
    %69 = vector.load %arg7[%c4_66, %c1_67, %c0_68] : memref<8x2x32xf32, #tpu.memory_space<vmem>>, vector<1x1x32xf32>
    %70 = vector.shape_cast %69 : vector<1x1x32xf32> to vector<1x32xf32>
    %71 = vector.shape_cast %68 : vector<1x32xf32> to vector<1x1x32xf32>
    tpu.vector_store %arg7[%c4_66, %c1_67, %c0_68], %71 {strides = array<i32>} : memref<8x2x32xf32, #tpu.memory_space<vmem>>, vector<1x1x32xf32>,
    %c0_69 = arith.constant 0 : index
    %c5 = arith.constant 5 : index
    %72 = memref.load %arg1[%c0_69, %c5] : memref<2x8xi32, #tpu.memory_space<smem>>
    %73 = arith.index_cast %72 : i32 to index
    %c0_70 = arith.constant 0 : index
    %74 = vector.load %arg6[%73, %c0_70] : memref<20x32xf32, #tpu.memory_space<vmem>>, vector<1x32xf32>
    %c5_71 = arith.constant 5 : index
    %c0_72 = arith.constant 0 : index
    %c0_73 = arith.constant 0 : index
    %75 = vector.load %arg7[%c5_71, %c0_72, %c0_73] : memref<8x2x32xf32, #tpu.memory_space<vmem>>, vector<1x1x32xf32>
    %76 = vector.shape_cast %75 : vector<1x1x32xf32> to vector<1x32xf32>
    %77 = vector.shape_cast %74 : vector<1x32xf32> to vector<1x1x32xf32>
    tpu.vector_store %arg7[%c5_71, %c0_72, %c0_73], %77 {strides = array<i32>} : memref<8x2x32xf32, #tpu.memory_space<vmem>>, vector<1x1x32xf32>,
    %c1_74 = arith.constant 1 : index
    %c5_75 = arith.constant 5 : index
    %78 = memref.load %arg1[%c1_74, %c5_75] : memref<2x8xi32, #tpu.memory_space<smem>>
    %79 = arith.index_cast %78 : i32 to index
    %c0_76 = arith.constant 0 : index
    %80 = vector.load %arg6[%79, %c0_76] : memref<20x32xf32, #tpu.memory_space<vmem>>, vector<1x32xf32>
    %c5_77 = arith.constant 5 : index
    %c1_78 = arith.constant 1 : index
    %c0_79 = arith.constant 0 : index
    %81 = vector.load %arg7[%c5_77, %c1_78, %c0_79] : memref<8x2x32xf32, #tpu.memory_space<vmem>>, vector<1x1x32xf32>
    %82 = vector.shape_cast %81 : vector<1x1x32xf32> to vector<1x32xf32>
    %83 = vector.shape_cast %80 : vector<1x32xf32> to vector<1x1x32xf32>
    tpu.vector_store %arg7[%c5_77, %c1_78, %c0_79], %83 {strides = array<i32>} : memref<8x2x32xf32, #tpu.memory_space<vmem>>, vector<1x1x32xf32>,
    %c0_80 = arith.constant 0 : index
    %c6 = arith.constant 6 : index
    %84 = memref.load %arg1[%c0_80, %c6] : memref<2x8xi32, #tpu.memory_space<smem>>
    %85 = arith.index_cast %84 : i32 to index
    %c0_81 = arith.constant 0 : index
    %86 = vector.load %arg6[%85, %c0_81] : memref<20x32xf32, #tpu.memory_space<vmem>>, vector<1x32xf32>
    %c6_82 = arith.constant 6 : index
    %c0_83 = arith.constant 0 : index
    %c0_84 = arith.constant 0 : index
    %87 = vector.load %arg7[%c6_82, %c0_83, %c0_84] : memref<8x2x32xf32, #tpu.memory_space<vmem>>, vector<1x1x32xf32>
    %88 = vector.shape_cast %87 : vector<1x1x32xf32> to vector<1x32xf32>
    %89 = vector.shape_cast %86 : vector<1x32xf32> to vector<1x1x32xf32>
    tpu.vector_store %arg7[%c6_82, %c0_83, %c0_84], %89 {strides = array<i32>} : memref<8x2x32xf32, #tpu.memory_space<vmem>>, vector<1x1x32xf32>,
    %c1_85 = arith.constant 1 : index
    %c6_86 = arith.constant 6 : index
    %90 = memref.load %arg1[%c1_85, %c6_86] : memref<2x8xi32, #tpu.memory_space<smem>>
    %91 = arith.index_cast %90 : i32 to index
    %c0_87 = arith.constant 0 : index
    %92 = vector.load %arg6[%91, %c0_87] : memref<20x32xf32, #tpu.memory_space<vmem>>, vector<1x32xf32>
    %c6_88 = arith.constant 6 : index
    %c1_89 = arith.constant 1 : index
    %c0_90 = arith.constant 0 : index
    %93 = vector.load %arg7[%c6_88, %c1_89, %c0_90] : memref<8x2x32xf32, #tpu.memory_space<vmem>>, vector<1x1x32xf32>
    %94 = vector.shape_cast %93 : vector<1x1x32xf32> to vector<1x32xf32>
    %95 = vector.shape_cast %92 : vector<1x32xf32> to vector<1x1x32xf32>
    tpu.vector_store %arg7[%c6_88, %c1_89, %c0_90], %95 {strides = array<i32>} : memref<8x2x32xf32, #tpu.memory_space<vmem>>, vector<1x1x32xf32>,
    %c0_91 = arith.constant 0 : index
    %c7 = arith.constant 7 : index
    %96 = memref.load %arg1[%c0_91, %c7] : memref<2x8xi32, #tpu.memory_space<smem>>
    %97 = arith.index_cast %96 : i32 to index
    %c0_92 = arith.constant 0 : index
    %98 = vector.load %arg6[%97, %c0_92] : memref<20x32xf32, #tpu.memory_space<vmem>>, vector<1x32xf32>
    %c7_93 = arith.constant 7 : index
    %c0_94 = arith.constant 0 : index
    %c0_95 = arith.constant 0 : index
    %99 = vector.load %arg7[%c7_93, %c0_94, %c0_95] : memref<8x2x32xf32, #tpu.memory_space<vmem>>, vector<1x1x32xf32>
    %100 = vector.shape_cast %99 : vector<1x1x32xf32> to vector<1x32xf32>
    %101 = vector.shape_cast %98 : vector<1x32xf32> to vector<1x1x32xf32>
    tpu.vector_store %arg7[%c7_93, %c0_94, %c0_95], %101 {strides = array<i32>} : memref<8x2x32xf32, #tpu.memory_space<vmem>>, vector<1x1x32xf32>,
    %c1_96 = arith.constant 1 : index
    %c7_97 = arith.constant 7 : index
    %102 = memref.load %arg1[%c1_96, %c7_97] : memref<2x8xi32, #tpu.memory_space<smem>>
    %103 = arith.index_cast %102 : i32 to index
    %c0_98 = arith.constant 0 : index
    %104 = vector.load %arg6[%103, %c0_98] : memref<20x32xf32, #tpu.memory_space<vmem>>, vector<1x32xf32>
    %c7_99 = arith.constant 7 : index
    %c1_100 = arith.constant 1 : index
    %c0_101 = arith.constant 0 : index
    %105 = vector.load %arg7[%c7_99, %c1_100, %c0_101] : memref<8x2x32xf32, #tpu.memory_space<vmem>>, vector<1x1x32xf32>
    %106 = vector.shape_cast %105 : vector<1x1x32xf32> to vector<1x32xf32>
    %107 = vector.shape_cast %104 : vector<1x32xf32> to vector<1x1x32xf32>
    tpu.vector_store %arg7[%c7_99, %c1_100, %c0_101], %107 {strides = array<i32>} : memref<8x2x32xf32, #tpu.memory_space<vmem>>, vector<1x1x32xf32>,
    %cst_102 = arith.constant 0.000000e+00 : f32
    %108 = vector.broadcast %cst_102 : f32 to vector<2x32xf32>
    %c0_103 = arith.constant 0 : index
    %c0_104 = arith.constant 0 : index
    %c0_105 = arith.constant 0 : index
    %109 = vector.load %arg7[%c0_103, %c0_104, %c0_105] : memref<8x2x32xf32, #tpu.memory_space<vmem>>, vector<1x2x32xf32>
    %110 = vector.shape_cast %109 : vector<1x2x32xf32> to vector<2x32xf32>
    %cst_106 = arith.constant dense<0.000000e+00> : vector<2x32xf32>
    %111 = tpu.matmul %108, %2, %cst_106 {dimension_numbers = #tpu.dot_dimension_numbers<[1], [0], [0], [1], [0, 0, 1, 1], [], []>} : vector<2x32xf32>, vector<32x32xf32>, vector<2x32xf32> -> vector<2x32xf32>
    %112 = arith.addf %110, %111 : vector<2x32xf32>
    %113 = math.tanh %112 : vector<2x32xf32>
    %c0_107 = arith.constant 0 : index
    %c0_108 = arith.constant 0 : index
    %c0_109 = arith.constant 0 : index
    %114 = vector.load %arg4[%c0_107, %c0_108, %c0_109] : memref<2x8x32xf32, #tpu.memory_space<vmem>>, vector<2x1x32xf32>
    %115 = vector.shape_cast %114 : vector<2x1x32xf32> to vector<2x32xf32>
    %116 = vector.shape_cast %113 : vector<2x32xf32> to vector<2x1x32xf32>
    tpu.vector_store %arg4[%c0_107, %c0_108, %c0_109], %116 {strides = array<i32>} : memref<2x8x32xf32, #tpu.memory_space<vmem>>, vector<2x1x32xf32>,
    %c1_110 = arith.constant 1 : index
    %c0_111 = arith.constant 0 : index
    %c0_112 = arith.constant 0 : index
    %117 = vector.load %arg7[%c1_110, %c0_111, %c0_112] : memref<8x2x32xf32, #tpu.memory_space<vmem>>, vector<1x2x32xf32>
    %118 = vector.shape_cast %117 : vector<1x2x32xf32> to vector<2x32xf32>
    %cst_113 = arith.constant dense<0.000000e+00> : vector<2x32xf32>
    %119 = tpu.matmul %113, %2, %cst_113 {dimension_numbers = #tpu.dot_dimension_numbers<[1], [0], [0], [1], [0, 0, 1, 1], [], []>} : vector<2x32xf32>, vector<32x32xf32>, vector<2x32xf32> -> vector<2x32xf32>
    %120 = arith.addf %118, %119 : vector<2x32xf32>
    %121 = math.tanh %120 : vector<2x32xf32>
    %c0_114 = arith.constant 0 : index
    %c1_115 = arith.constant 1 : index
    %c0_116 = arith.constant 0 : index
    %122 = vector.load %arg4[%c0_114, %c1_115, %c0_116] : memref<2x8x32xf32, #tpu.memory_space<vmem>>, vector<2x1x32xf32>
    %123 = vector.shape_cast %122 : vector<2x1x32xf32> to vector<2x32xf32>
    %124 = vector.shape_cast %121 : vector<2x32xf32> to vector<2x1x32xf32>
    tpu.vector_store %arg4[%c0_114, %c1_115, %c0_116], %124 {strides = array<i32>} : memref<2x8x32xf32, #tpu.memory_space<vmem>>, vector<2x1x32xf32>,
    %c2_117 = arith.constant 2 : index
    %c0_118 = arith.constant 0 : index
    %c0_119 = arith.constant 0 : index
    %125 = vector.load %arg7[%c2_117, %c0_118, %c0_119] : memref<8x2x32xf32, #tpu.memory_space<vmem>>, vector<1x2x32xf32>
    %126 = vector.shape_cast %125 : vector<1x2x32xf32> to vector<2x32xf32>
    %cst_120 = arith.constant dense<0.000000e+00> : vector<2x32xf32>
    %127 = tpu.matmul %121, %2, %cst_120 {dimension_numbers = #tpu.dot_dimension_numbers<[1], [0], [0], [1], [0, 0, 1, 1], [], []>} : vector<2x32xf32>, vector<32x32xf32>, vector<2x32xf32> -> vector<2x32xf32>
    %128 = arith.addf %126, %127 : vector<2x32xf32>
    %129 = math.tanh %128 : vector<2x32xf32>
    %c0_121 = arith.constant 0 : index
    %c2_122 = arith.constant 2 : index
    %c0_123 = arith.constant 0 : index
    %130 = vector.load %arg4[%c0_121, %c2_122, %c0_123] : memref<2x8x32xf32, #tpu.memory_space<vmem>>, vector<2x1x32xf32>
    %131 = vector.shape_cast %130 : vector<2x1x32xf32> to vector<2x32xf32>
    %132 = vector.shape_cast %129 : vector<2x32xf32> to vector<2x1x32xf32>
    tpu.vector_store %arg4[%c0_121, %c2_122, %c0_123], %132 {strides = array<i32>} : memref<2x8x32xf32, #tpu.memory_space<vmem>>, vector<2x1x32xf32>,
    %c3_124 = arith.constant 3 : index
    %c0_125 = arith.constant 0 : index
    %c0_126 = arith.constant 0 : index
    %133 = vector.load %arg7[%c3_124, %c0_125, %c0_126] : memref<8x2x32xf32, #tpu.memory_space<vmem>>, vector<1x2x32xf32>
    %134 = vector.shape_cast %133 : vector<1x2x32xf32> to vector<2x32xf32>
    %cst_127 = arith.constant dense<0.000000e+00> : vector<2x32xf32>
    %135 = tpu.matmul %129, %2, %cst_127 {dimension_numbers = #tpu.dot_dimension_numbers<[1], [0], [0], [1], [0, 0, 1, 1], [], []>} : vector<2x32xf32>, vector<32x32xf32>, vector<2x32xf32> -> vector<2x32xf32>
    %136 = arith.addf %134, %135 : vector<2x32xf32>
    %137 = math.tanh %136 : vector<2x32xf32>
    %c0_128 = arith.constant 0 : index
    %c3_129 = arith.constant 3 : index
    %c0_130 = arith.constant 0 : index
    %138 = vector.load %arg4[%c0_128, %c3_129, %c0_130] : memref<2x8x32xf32, #tpu.memory_space<vmem>>, vector<2x1x32xf32>
    %139 = vector.shape_cast %138 : vector<2x1x32xf32> to vector<2x32xf32>
    %140 = vector.shape_cast %137 : vector<2x32xf32> to vector<2x1x32xf32>
    tpu.vector_store %arg4[%c0_128, %c3_129, %c0_130], %140 {strides = array<i32>} : memref<2x8x32xf32, #tpu.memory_space<vmem>>, vector<2x1x32xf32>,
    %c4_131 = arith.constant 4 : index
    %c0_132 = arith.constant 0 : index
    %c0_133 = arith.constant 0 : index
    %141 = vector.load %arg7[%c4_131, %c0_132, %c0_133] : memref<8x2x32xf32, #tpu.memory_space<vmem>>, vector<1x2x32xf32>
    %142 = vector.shape_cast %141 : vector<1x2x32xf32> to vector<2x32xf32>
    %cst_134 = arith.constant dense<0.000000e+00> : vector<2x32xf32>
    %143 = tpu.matmul %137, %2, %cst_134 {dimension_numbers = #tpu.dot_dimension_numbers<[1], [0], [0], [1], [0, 0, 1, 1], [], []>} : vector<2x32xf32>, vector<32x32xf32>, vector<2x32xf32> -> vector<2x32xf32>
    %144 = arith.addf %142, %143 : vector<2x32xf32>
    %145 = math.tanh %144 : vector<2x32xf32>
    %c0_135 = arith.constant 0 : index
    %c4_136 = arith.constant 4 : index
    %c0_137 = arith.constant 0 : index
    %146 = vector.load %arg4[%c0_135, %c4_136, %c0_137] : memref<2x8x32xf32, #tpu.memory_space<vmem>>, vector<2x1x32xf32>
    %147 = vector.shape_cast %146 : vector<2x1x32xf32> to vector<2x32xf32>
    %148 = vector.shape_cast %145 : vector<2x32xf32> to vector<2x1x32xf32>
    tpu.vector_store %arg4[%c0_135, %c4_136, %c0_137], %148 {strides = array<i32>} : memref<2x8x32xf32, #tpu.memory_space<vmem>>, vector<2x1x32xf32>,
    %c5_138 = arith.constant 5 : index
    %c0_139 = arith.constant 0 : index
    %c0_140 = arith.constant 0 : index
    %149 = vector.load %arg7[%c5_138, %c0_139, %c0_140] : memref<8x2x32xf32, #tpu.memory_space<vmem>>, vector<1x2x32xf32>
    %150 = vector.shape_cast %149 : vector<1x2x32xf32> to vector<2x32xf32>
    %cst_141 = arith.constant dense<0.000000e+00> : vector<2x32xf32>
    %151 = tpu.matmul %145, %2, %cst_141 {dimension_numbers = #tpu.dot_dimension_numbers<[1], [0], [0], [1], [0, 0, 1, 1], [], []>} : vector<2x32xf32>, vector<32x32xf32>, vector<2x32xf32> -> vector<2x32xf32>
    %152 = arith.addf %150, %151 : vector<2x32xf32>
    %153 = math.tanh %152 : vector<2x32xf32>
    %c0_142 = arith.constant 0 : index
    %c5_143 = arith.constant 5 : index
    %c0_144 = arith.constant 0 : index
    %154 = vector.load %arg4[%c0_142, %c5_143, %c0_144] : memref<2x8x32xf32, #tpu.memory_space<vmem>>, vector<2x1x32xf32>
    %155 = vector.shape_cast %154 : vector<2x1x32xf32> to vector<2x32xf32>
    %156 = vector.shape_cast %153 : vector<2x32xf32> to vector<2x1x32xf32>
    tpu.vector_store %arg4[%c0_142, %c5_143, %c0_144], %156 {strides = array<i32>} : memref<2x8x32xf32, #tpu.memory_space<vmem>>, vector<2x1x32xf32>,
    %c6_145 = arith.constant 6 : index
    %c0_146 = arith.constant 0 : index
    %c0_147 = arith.constant 0 : index
    %157 = vector.load %arg7[%c6_145, %c0_146, %c0_147] : memref<8x2x32xf32, #tpu.memory_space<vmem>>, vector<1x2x32xf32>
    %158 = vector.shape_cast %157 : vector<1x2x32xf32> to vector<2x32xf32>
    %cst_148 = arith.constant dense<0.000000e+00> : vector<2x32xf32>
    %159 = tpu.matmul %153, %2, %cst_148 {dimension_numbers = #tpu.dot_dimension_numbers<[1], [0], [0], [1], [0, 0, 1, 1], [], []>} : vector<2x32xf32>, vector<32x32xf32>, vector<2x32xf32> -> vector<2x32xf32>
    %160 = arith.addf %158, %159 : vector<2x32xf32>
    %161 = math.tanh %160 : vector<2x32xf32>
    %c0_149 = arith.constant 0 : index
    %c6_150 = arith.constant 6 : index
    %c0_151 = arith.constant 0 : index
    %162 = vector.load %arg4[%c0_149, %c6_150, %c0_151] : memref<2x8x32xf32, #tpu.memory_space<vmem>>, vector<2x1x32xf32>
    %163 = vector.shape_cast %162 : vector<2x1x32xf32> to vector<2x32xf32>
    %164 = vector.shape_cast %161 : vector<2x32xf32> to vector<2x1x32xf32>
    tpu.vector_store %arg4[%c0_149, %c6_150, %c0_151], %164 {strides = array<i32>} : memref<2x8x32xf32, #tpu.memory_space<vmem>>, vector<2x1x32xf32>,
    %c7_152 = arith.constant 7 : index
    %c0_153 = arith.constant 0 : index
    %c0_154 = arith.constant 0 : index
    %165 = vector.load %arg7[%c7_152, %c0_153, %c0_154] : memref<8x2x32xf32, #tpu.memory_space<vmem>>, vector<1x2x32xf32>
    %166 = vector.shape_cast %165 : vector<1x2x32xf32> to vector<2x32xf32>
    %cst_155 = arith.constant dense<0.000000e+00> : vector<2x32xf32>
    %167 = tpu.matmul %161, %2, %cst_155 {dimension_numbers = #tpu.dot_dimension_numbers<[1], [0], [0], [1], [0, 0, 1, 1], [], []>} : vector<2x32xf32>, vector<32x32xf32>, vector<2x32xf32> -> vector<2x32xf32>
    %168 = arith.addf %166, %167 : vector<2x32xf32>
    %169 = math.tanh %168 : vector<2x32xf32>
    %c0_156 = arith.constant 0 : index
    %c7_157 = arith.constant 7 : index
    %c0_158 = arith.constant 0 : index
    %170 = vector.load %arg4[%c0_156, %c7_157, %c0_158] : memref<2x8x32xf32, #tpu.memory_space<vmem>>, vector<2x1x32xf32>
    %171 = vector.shape_cast %170 : vector<2x1x32xf32> to vector<2x32xf32>
    %172 = vector.shape_cast %169 : vector<2x32xf32> to vector<2x1x32xf32>
    tpu.vector_store %arg4[%c0_156, %c7_157, %c0_158], %172 {strides = array<i32>} : memref<2x8x32xf32, #tpu.memory_space<vmem>>, vector<2x1x32xf32>,
    %cst_159 = arith.constant dense<0.000000e+00> : vector<2x32xf32>
    %173 = tpu.matmul %169, %3, %cst_159 {dimension_numbers = #tpu.dot_dimension_numbers<[1], [0], [0], [1], [0, 0, 1, 1], [], []>} : vector<2x32xf32>, vector<32x32xf32>, vector<2x32xf32> -> vector<2x32xf32>
    %174 = vector.broadcast %6 : vector<1x32xf32> to vector<2x32xf32>
    %175 = arith.addf %173, %174 : vector<2x32xf32>
    %cst_160 = arith.constant 0.000000e+00 : f32
    %176 = vector.broadcast %cst_160 : f32 to vector<2x32xf32>
    %177 = arith.maximumf %175, %176 : vector<2x32xf32>
    %cst_161 = arith.constant dense<0.000000e+00> : vector<2x32xf32>
    %178 = tpu.matmul %177, %4, %cst_161 {dimension_numbers = #tpu.dot_dimension_numbers<[1], [0], [0], [1], [0, 0, 1, 1], [], []>} : vector<2x32xf32>, vector<32x32xf32>, vector<2x32xf32> -> vector<2x32xf32>
    %179 = vector.broadcast %7 : vector<1x32xf32> to vector<2x32xf32>
    %180 = arith.addf %178, %179 : vector<2x32xf32>
    %181 = math.tanh %180 : vector<2x32xf32>
    %c0_162 = arith.constant 0 : index
    %c0_163 = arith.constant 0 : index
    %c0_164 = arith.constant 0 : index
    %182 = vector.load %arg5[%c0_162, %c0_163, %c0_164] : memref<1x2x32xf32, #tpu.memory_space<vmem>>, vector<1x2x32xf32>
    %183 = vector.shape_cast %182 : vector<1x2x32xf32> to vector<2x32xf32>
    %184 = vector.shape_cast %181 : vector<2x32xf32> to vector<1x2x32xf32>
    tpu.vector_store %arg5[%c0_162, %c0_163, %c0_164], %184 {strides = array<i32>} : memref<1x2x32xf32, #tpu.memory_space<vmem>>, vector<1x2x32xf32>,
    return
  }
  func.func @transform_0(%arg0: i32, %arg1: memref<2x8xi32, #tpu.memory_space<smem>>) -> (i32, i32) {
    %c0_i32 = arith.constant 0 : i32
    %c0_i32_0 = arith.constant 0 : i32
    %c0_i32_1 = arith.constant 0 : i32
    return %c0_i32, %c0_i32_0 : i32, i32
  }
  func.func @transform_1(%arg0: i32, %arg1: memref<2x8xi32, #tpu.memory_space<smem>>) -> (i32, i32) {
    %c0_i32 = arith.constant 0 : i32
    %c0_i32_0 = arith.constant 0 : i32
    %c0_i32_1 = arith.constant 0 : i32
    return %c0_i32, %c0_i32_0 : i32, i32
  }
  func.func @transform_2(%arg0: i32, %arg1: memref<2x8xi32, #tpu.memory_space<smem>>) -> (i32, i32, i32) {
    %c0_i32 = arith.constant 0 : i32
    %c0_i32_0 = arith.constant 0 : i32
    %c0_i32_1 = arith.constant 0 : i32
    %c0_i32_2 = arith.constant 0 : i32
    return %c0_i32, %c0_i32_0, %c0_i32_1 : i32, i32, i32
  }
  func.func @transform_3(%arg0: i32, %arg1: memref<2x8xi32, #tpu.memory_space<smem>>) -> (i32, i32, i32) {
    %c0_i32 = arith.constant 0 : i32
    %c0_i32_0 = arith.constant 0 : i32
    %c0_i32_1 = arith.constant 0 : i32
    %c0_i32_2 = arith.constant 0 : i32
    return %c0_i32, %c0_i32_0, %c0_i32_1 : i32, i32, i32
  }
}

</mosaic_0001>

<bundles_post_ra>
// kernel: tpu_custom_call.1
= control target key start
LH: loop header
LB: loop body
LE: loop exit
PB: predicated region body
PF: predicated region fallthrough
CT: control target
= control target key end

     0   :  { %s1922_s0 = inlined_call_operand.vmem [shape: s32[2,8], index: 0, kind: input, shape index: {}]   ;;  %s1923_s1 = inlined_call_operand.vmem [shape: f32[152,32], index: 1, kind: input, shape index: {}]   ;;  %s1924_s2 = inlined_call_operand.vmem [shape: f32[3,32], index: 2, kind: input, shape index: {}]   ;;  %s1925_s3 = inlined_call_operand.hbm [shape: f32[2,8,32], index: 3, kind: output, shape index: {0}]   ;;  %s1926_s4 = inlined_call_operand.hbm [shape: f32[1,2,32], index: 4, kind: output, shape index: {1}]  }
   0x1   :  { %s10_s17 = sshll.u32 %s1922_s0, 4  ;;  %s11_s17 = int_to_ptr.vmem [resolvable:$true] %s10_s17 }
   0x2   :  { %s1541_s18 = scalar_lea.vmem %s11_s17, 32  ;;  %p1546_p1 = scmp.lt.s32.totalorder %s11_s17, %s11_s17 }
   0x3   :  { %p1542_p0 = scmp.ne.s32.totalorder %s11_s17, %s1541_s18  ;;  %p1547_p2 = scmp.lt.s32.totalorder %s1541_s18, %s1541_s18 }
   0x5   :  { %p1548_p3 = por %p1547_p2, %p1546_p1 }
   0x7   :  { %p1549_p4 = pnand %p1548_p3, %p1542_p0 }
   0x9   :  { %1552 = shalt.err (!%p1549_p4)  }
   0xa   :  { %s1603_s19 = smov [#allocation5]  }
   0xb   :  { %13 = dma.vmem_to_smem %s11_s17, 32, %s1603_s19, [#allocation4] }
   0xc   :  { %1597 = dma.done.wait [#allocation4], 32 }
   0xd   :  { %1598 = vsyncadd [#allocation4], 4294967264 }
   0xe   :  { %15 = sfence }
   0xf   :  { %16 = vsyncpa [#allocation7], 0  ;;  %v25_v0 = vld [vmem:[%s1923_s1 + $0x18] sm:$0xff]  ;;  %v26_v1 = vld [vmem:[%s1923_s1 + $0x20] sm:$0xff]  ;;  %v1604_v3 = vmov 0.0|0.0   ;;  %vm1605_vm0 = vmmov 0  }
  0x10   :  { %v27_v2 = vld [vmem:[%s1923_s1 + $0x28] sm:$0xff]  ;;  %1448 = vmatprep.subr.bf16.mxu0 %v1604_v3  ;;  %v1449_v4 = vpack.c.bf16 %v26_v1, %v25_v0  ;;  %v28_v5 = vld [vmem:[%s1923_s1 + $0x30] sm:$0xff]  ;;  %v1606_v6 = vmov 0.0   ;;  %1454 = vmatprep.subr.bf16.mxu1 %v1604_v3  ;;  %v29_v7 = vld [vmem:[%s1923_s1 + $0x38] sm:$0xff] }
  0x11   :  { %1329 = vmatprep.mubr.msk.f32.mxu0 %vm1605_vm0, %v1606_v6  ;;  %v30_v8 = vld [vmem:[%s1923_s1 + $0x40] sm:$0xff]  ;;  %1346 = vmatprep.mubr.msk.f32.mxu1 %vm1605_vm0, %v1606_v6  ;;  %v1452_v9 = vpack.c.bf16 %v28_v5, %v27_v2  ;;  %v31_v11 = vld [vmem:[%s1923_s1 + $0x48] sm:$0xff]  ;;  %v32_v12 = vld [vmem:[%s1923_s1 + $0x50] sm:$0xff] }
  0x12   :  { %1450 = vmatpush3.bf16.msra.mxu0 %v1449_v4  ;;  %v1664_v10 = vpack.c.bf16 %v30_v8, %v29_v7 }
  0x13   :  { %1451 = vmatprep.subr.bf16.mxu0 %v1604_v3 }
  0x14   :  { %17 = vsyncpa [#allocation9], 0  ;;  %1456 = vmatpush3.bf16.msra.mxu1 %v1664_v10  ;;  %v1674_v13 = vpack.c.bf16 %v32_v12, %v31_v11  ;;  %v22_v14 = vld [vmem:[%s1923_s1] sm:$0xff]  ;;  %vm48_vm1 = vcmask 261120   ;;  %v23_v15 = vld [vmem:[%s1923_s1 + $0x8] sm:$0xff]  ;;  %s1712_s17 = sld [smem:[#allocation5]]  ;;  %v294_v49 = vlaneseq }
  0x15   :  { %1457 = vmatprep.subr.bf16.mxu1 %v1604_v3  ;;  %v24_v16 = vld [vmem:[%s1923_s1 + $0x10] sm:$0xf]  ;;  %v1234_v17 = vld [vmem:[%s1924_s2] ss:$0 sm:$0xff]  ;;  %s1714_s18 = sld [smem:[#allocation5 + $0x80]]  ;;  %s1719_s19 = sld [smem:[#allocation5 + $0x1]] }
  0x16   :  { %1453 = vmatpush3.bf16.msra.mxu0 %v1452_v9  ;;  %s1721_s20 = sld [smem:[#allocation5 + $0x81]]  ;;  %s1723_s21 = sld [smem:[#allocation5 + $0x2]]  ;;  %vm140_vm2 = vcmask 257024   ;;  %vm145_vm3 = vcmask 253952   ;;  %v1607_v47 = vmov 1966171168  }
  0x17   :  { %1466 = vmatprep.subr.bf16.mxu0 %v1604_v3  ;;  %s1725_s22 = sld [smem:[#allocation5 + $0x82]]  ;;  %s1727_s0 = sld [smem:[#allocation5 + $0x3]]  ;;  %v292_v48 = vunpack.c.l.s4 %v1607_v47  ;;  %v295_v51 = vshrl.u32 %v294_v49, 7 }
  0x18   :  { %1459 = vmatpush3.bf16.msra.mxu1 %v1674_v13  ;;  %s1729_s23 = sld [smem:[#allocation5 + $0x83]]  ;;  %s1731_s24 = sld [smem:[#allocation5 + $0x4]] }
  0x19   :  { %1330 = vmatmul.mubr.msk.f32.vlgmr.msra.gmra.mrb[0].mxu0 %vm48_vm1, %v22_v14  ;;  %1460 = vmatprep.subr.bf16.mxu1 %v1604_v3  ;;  %s1733_s25 = sld [smem:[#allocation5 + $0x84]]  ;;  %s1736_s26 = sld [smem:[#allocation5 + $0x5]]  ;;  %v293_v50 = vunpack.c.0.s8 %v292_v48 }
  0x1a   :  { %1332 = vmatprep.mubr.msk.f32.mxu0 %vm1605_vm0, %v1606_v6  ;;  %1468 = vmatpush3.bf16.msra.mxu0 %v1664_v10  ;;  %s1738_s27 = sld [smem:[#allocation5 + $0x85]]  ;;  %s1740_s28 = sld [smem:[#allocation5 + $0x6]] }
  0x1b   :  { %1347 = vmatmul.mubr.f32.vlgmr.msra.gmra.mrb[0].mxu1 %v1606_v6  ;;  %1469 = vmatprep.subr.bf16.mxu0 %v1604_v3  ;;  %s1742_s29 = sld [smem:[#allocation5 + $0x86]]  ;;  %s1744_s30 = sld [smem:[#allocation5 + $0x7]]  ;;  %v1781_v52 = vsub.s32 %v293_v50, %v295_v51  ;;  %v33_v50 = vld [vmem:[%s1923_s1 + $0x58] sm:$0xff]  ;;  %v34_v51 = vld [vmem:[%s1923_s1 + $0x60] sm:$0xff] }
  0x1c   :  { %1462 = vmatpush3.bf16.msra.mxu1 %v1664_v10  ;;  %1357 = vmatprep.mubr.msk.f32.mxu1 %vm1605_vm0, %v1606_v6  ;;  %s1746_s5 = sld [smem:[#allocation5 + $0x87]]  ;;  %s143_s6 = scalar_lea.vmem [#allocation2], %s1712_s17 }
  0x1d   :  { %1333 = vmatmul.mubr.msk.f32.gmra.mrb[2].mxu0 %vm48_vm1, %v23_v15  ;;  %1463 = vmatprep.subr.bf16.mxu1 %v1604_v3  ;;  %s148_s7 = scalar_lea.vmem [#allocation2], %s1714_s18  ;;  %s152_s8 = scalar_lea.vmem [#allocation2], %s1719_s19 }
  0x1e   :  { %1335 = vmatprep.mubr.msk.f32.mxu0 %vm1605_vm0, %v1606_v6  ;;  %1471 = vmatpush3.bf16.msra.mxu0 %v1674_v13  ;;  %s157_s9 = scalar_lea.vmem [#allocation2], %s1721_s20  ;;  %s161_s10 = scalar_lea.vmem [#allocation2], %s1723_s21 }
  0x1f   :  { %1478 = vmatprep.subr.bf16.mxu0 %v1604_v3  ;;  %s166_s11 = scalar_lea.vmem [#allocation2], %s1725_s22  ;;  %s170_s12 = scalar_lea.vmem [#allocation2], %s1727_s0 }
  0x20   :  { %1465 = vmatpush3.bf16.msra.mxu1 %v1674_v13  ;;  %s175_s13 = scalar_lea.vmem [#allocation2], %s1729_s23  ;;  %s179_s14 = scalar_lea.vmem [#allocation2], %s1731_s24 }
  0x21   :  { %1336 = vmatmul.mubr.msk.f32.gmra.mrb[4].mxu0 %vm48_vm1, %v24_v16  ;;  %1472 = vmatprep.subr.bf16.mxu1 %v1604_v3  ;;  %s184_s15 = scalar_lea.vmem [#allocation2], %s1733_s25  ;;  %s188_s16 = scalar_lea.vmem [#allocation2], %s1736_s26 }
  0x22   :  { %1368 = vmatprep.mubr.msk.f32.mxu0 %vm1605_vm0, %v1606_v6  ;;  %s193_s17 = scalar_lea.vmem [#allocation2], %s1738_s27  ;;  %s197_s18 = scalar_lea.vmem [#allocation2], %s1740_s28 }
  0x23   :  { %s202_s19 = scalar_lea.vmem [#allocation2], %s1742_s29  ;;  %s206_s20 = scalar_lea.vmem [#allocation2], %s1744_s30 }
  0x24   :  { %s211_s21 = scalar_lea.vmem [#allocation2], %s1746_s5 }
  0xec   :  { %v124_v18 = vpop.f32.mrb[0].mxu0 }
  0xed   :  { %v125_v19 = vadd.f32 %v1234_v17, %v124_v18  ;;  %v1331_v20 = vpop.f32.mrb[1].mxu0 }
  0xee   :  { %v1716_v21 = vpop.f32.mrb[0].mxu1 }
  0xef   :  { %138 = vst.msk [vmem:[#allocation2] sm:$0xff] %vm48_vm1, %v125_v19  ;;  %v1348_v22 = vpop.f32.mrb[1].mxu1 }
  0xf0   :  { %v129_v23 = vpop.f32.mrb[2].mxu0 }
  0xf1   :  { %v130_v24 = vadd.f32 %v1234_v17, %v129_v23  ;;  %v1334_v25 = vpop.f32.mrb[3].mxu0 }
  0xf3   :  { %139 = vst.msk [vmem:[#allocation2 + $0x8] sm:$0xff] %vm48_vm1, %v130_v24 }
  0xf4   :  { %v134_v26 = vpop.f32.mrb[4].mxu0 }
  0xf5   :  { %v135_v27 = vadd.f32 %v1234_v17, %v134_v26  ;;  %v1337_v28 = vpop.f32.mrb[5].mxu0 }
  0xf7   :  { %141 = vst.msk [vmem:[#allocation2 + $0x10] sm:$0xf] %vm140_vm2, %v135_v27 }
  0xfe   :  { %v144_v29 = vld [vmem:[%s143_s6] sm:$0x1] }
  0xff   :  { %v149_v30 = vld [vmem:[%s148_s7] sm:$0x1]  ;;  %146 = vst.msk [vmem:[#allocation3] sm:$0x1] %vm145_vm3, %v144_v29 }
 0x100   :  { %v153_v31 = vld [vmem:[%s152_s8] sm:$0x1]  ;;  %150 = vst.msk [vmem:[#allocation3 + $0x1] sm:$0x1] %vm145_vm3, %v149_v30 }
 0x101   :  { %155 = vst.msk [vmem:[#allocation3 + $0x2] sm:$0x1] %vm145_vm3, %v153_v31  ;;  %v158_v32 = vld [vmem:[%s157_s9] sm:$0x1] }
 0x102   :  { %v162_v33 = vld [vmem:[%s161_s10] sm:$0x1]  ;;  %159 = vst.msk [vmem:[#allocation3 + $0x3] sm:$0x1] %vm145_vm3, %v158_v32 }
 0x103   :  { %v167_v34 = vld [vmem:[%s166_s11] sm:$0x1]  ;;  %164 = vst.msk [vmem:[#allocation3 + $0x4] sm:$0x1] %vm145_vm3, %v162_v33 }
 0x104   :  { %168 = vst.msk [vmem:[#allocation3 + $0x5] sm:$0x1] %vm145_vm3, %v167_v34  ;;  %v171_v35 = vld [vmem:[%s170_s12] sm:$0x1] }
 0x105   :  { %v176_v36 = vld [vmem:[%s175_s13] sm:$0x1]  ;;  %173 = vst.msk [vmem:[#allocation3 + $0x6] sm:$0x1] %vm145_vm3, %v171_v35  ;;  %s1608_s13 = smov [#allocation6]  }
 0x106   :  { %v180_v37 = vld [vmem:[%s179_s14] sm:$0x1]  ;;  %177 = vst.msk [vmem:[#allocation3 + $0x7] sm:$0x1] %vm145_vm3, %v176_v36  ;;  %s1193_s14 = sshll.u32 %s1608_s13, 4  ;;  %s1194_s14 = int_to_ptr.vmem [resolvable:$true] %s1193_s14 }
 0x107   :  { %182 = vst.msk [vmem:[#allocation3 + $0x8] sm:$0x1] %vm145_vm3, %v180_v37  ;;  %v185_v38 = vld [vmem:[%s184_s15] sm:$0x1]  ;;  %v214_v45 = vld [vmem:[#allocation3] sm:$0x3]  ;;  %p1558_p6 = scmp.lt.s32.totalorder %s1194_s14, %s1194_s14 }
 0x108   :  { %v189_v39 = vld [vmem:[%s188_s16] sm:$0x1]  ;;  %186 = vst.msk [vmem:[#allocation3 + $0x9] sm:$0x1] %vm145_vm3, %v185_v38  ;;  %v288_v46 = vadd.f32 %v1716_v21, %v214_v45  ;;  %s1553_s15 = scalar_lea.vmem %s1194_s14, 256 }
 0x109   :  { %v194_v40 = vld [vmem:[%s193_s17] sm:$0x1]  ;;  %191 = vst.msk [vmem:[#allocation3 + $0xa] sm:$0x1] %vm145_vm3, %v189_v39  ;;  %v317_v58 = vld [vmem:[#allocation3 + $0x2] sm:$0x3]  ;;  %p1554_p5 = scmp.ne.s32.totalorder %s1194_s14, %s1553_s15  ;;  %p1559_p7 = scmp.lt.s32.totalorder %s1553_s15, %s1553_s15 }
 0x10a   :  { %195 = vst.msk [vmem:[#allocation3 + $0xb] sm:$0x1] %vm145_vm3, %v194_v40  ;;  %v198_v41 = vld [vmem:[%s197_s18] sm:$0x1]  ;;  %1523 = vtanh.f32 %v288_v46 }
 0x10b   :  { %v203_v42 = vld [vmem:[%s202_s19] sm:$0x1]  ;;  %200 = vst.msk [vmem:[#allocation3 + $0xc] sm:$0x1] %vm145_vm3, %v198_v41  ;;  %v419_v4 = vld [vmem:[#allocation3 + $0x4] sm:$0x3]  ;;  %p1560_p8 = por %p1559_p7, %p1558_p6 }
 0x10c   :  { %v207_v43 = vld [vmem:[%s206_s20] sm:$0x1]  ;;  %204 = vst.msk [vmem:[#allocation3 + $0xd] sm:$0x1] %vm145_vm3, %v203_v42 }
 0x10d   :  { %209 = vst.msk [vmem:[#allocation3 + $0xe] sm:$0x1] %vm145_vm3, %v207_v43  ;;  %v212_v44 = vld [vmem:[%s211_s21] sm:$0x1]  ;;  %v521_v16 = vld [vmem:[#allocation3 + $0x6] sm:$0x3]  ;;  %p1561_p9 = pnand %p1560_p8, %p1554_p5 }
 0x10e   :  { %213 = vst.msk [vmem:[#allocation3 + $0xf] sm:$0x1] %vm145_vm3, %v212_v44 }
 0x10f   :  { %v623_v25 = vld [vmem:[#allocation3 + $0x8] sm:$0x3] }
 0x111   :  { %v725_v34 = vld [vmem:[#allocation3 + $0xa] sm:$0x3] }
 0x113   :  { %v827_v41 = vld [vmem:[#allocation3 + $0xc] sm:$0x3] }
 0x114   :  { %v1524_v53 = vpop.eup %1523 }
 0x115   :  { %v297_v54 = vrot.slane %v1524_v53, %v1781_v52  ;;  %1358 = vmatmul.mubr.msk.f32.vlgmr.msra.gmra.mrb[2].mxu1 %vm48_vm1, %v1524_v53  ;;  %v1503_v53 = vpack.c.bf16 %v34_v51, %v33_v50 }
 0x116   :  { %1474 = vmatpush3.bf16.msra.mxu1 %v1664_v10  ;;  %1379 = vmatprep.mubr.msk.f32.mxu1 %vm1605_vm0, %v1606_v6 }
 0x117   :  { %v298_v55 = vcombine.high %v297_v54, %v297_v54  ;;  %v305_v56 = vrot.slane %v297_v54, %v1781_v52  ;;  %1475 = vmatprep.subr.bf16.mxu1 %v1604_v3  ;;  %v36_v54 = vld [vmem:[%s1923_s1 + $0x70] sm:$0xff] }
 0x119   :  { %v312_v57 = vrot.slane %v298_v55, %v1781_v52  ;;  %315 = vst.msk [vmem:[#allocation6] sm:$0x1] %vm145_vm3, %v305_v56  ;;  %v37_v56 = vld [vmem:[%s1923_s1 + $0x78] sm:$0xff] }
 0x11a   :  { %1477 = vmatpush3.bf16.msra.mxu1 %v1674_v13 }
 0x11b   :  { %316 = vst.msk [vmem:[#allocation6 + $0x8] sm:$0x1] %vm145_vm3, %v312_v57  ;;  %1484 = vmatprep.subr.bf16.mxu1 %v1604_v3  ;;  %v38_v57 = vld [vmem:[%s1923_s1 + $0x80] sm:$0xff] }
 0x1e8   :  { %v386_v59 = vpop.f32.mrb[2].mxu1 }
 0x1e9   :  { %v390_v60 = vadd.f32 %v386_v59, %v317_v58  ;;  %v1359_v61 = vpop.f32.mrb[3].mxu1  ;;  %v1509_v58 = vpack.c.bf16 %v38_v57, %v37_v56  ;;  %v929_v59 = vld [vmem:[#allocation3 + $0xe] sm:$0x3] }
 0x1eb   :  { %1525 = vtanh.f32 %v390_v60 }
 0x1f5   :  { %v1526_v62 = vpop.eup %1525 }
 0x1f6   :  { %v399_v63 = vrot.slane %v1526_v62, %v1781_v52  ;;  %1369 = vmatmul.mubr.msk.f32.vlgmr.msra.gmra.mrb[6].mxu0 %vm48_vm1, %v1526_v62 }
 0x1f7   :  { %1480 = vmatpush3.bf16.msra.mxu0 %v1664_v10  ;;  %1390 = vmatprep.mubr.msk.f32.mxu0 %vm1605_vm0, %v1606_v6 }
 0x1f8   :  { %v400_v0 = vcombine.high %v399_v63, %v399_v63  ;;  %v407_v1 = vrot.slane %v399_v63, %v1781_v52  ;;  %1481 = vmatprep.subr.bf16.mxu0 %v1604_v3 }
 0x1fa   :  { %v414_v2 = vrot.slane %v400_v0, %v1781_v52  ;;  %417 = vst.msk [vmem:[#allocation6 + $0x1] sm:$0x1] %vm145_vm3, %v407_v1 }
 0x1fb   :  { %1483 = vmatpush3.bf16.msra.mxu0 %v1674_v13 }
 0x1fc   :  { %418 = vst.msk [vmem:[#allocation6 + $0x9] sm:$0x1] %vm145_vm3, %v414_v2  ;;  %1490 = vmatprep.subr.bf16.mxu0 %v1604_v3 }
 0x2c9   :  { %v488_v5 = vpop.f32.mrb[6].mxu0 }
 0x2ca   :  { %v492_v7 = vadd.f32 %v488_v5, %v419_v4  ;;  %v1370_v8 = vpop.f32.mrb[7].mxu0  ;;  %v40_v5 = vld [vmem:[%s1923_s1 + $0x90] sm:$0xff] }
 0x2cb   :  { %v1260_v8 = vld [vmem:[%s1924_s2 + $0x1] ss:$0 sm:$0xff] }
 0x2cc   :  { %1527 = vtanh.f32 %v492_v7 }
 0x2d6   :  { %v1528_v9 = vpop.eup %1527 }
 0x2d7   :  { %v501_v11 = vrot.slane %v1528_v9, %v1781_v52  ;;  %1380 = vmatmul.mubr.msk.f32.vlgmr.msra.gmra.mrb[4].mxu1 %vm48_vm1, %v1528_v9 }
 0x2d8   :  { %1486 = vmatpush3.bf16.msra.mxu1 %v1664_v10  ;;  %1401 = vmatprep.mubr.msk.f32.mxu1 %vm1605_vm0, %v1606_v6 }
 0x2d9   :  { %v502_v12 = vcombine.high %v501_v11, %v501_v11  ;;  %v509_v14 = vrot.slane %v501_v11, %v1781_v52  ;;  %1487 = vmatprep.subr.bf16.mxu1 %v1604_v3 }
 0x2db   :  { %v516_v15 = vrot.slane %v502_v12, %v1781_v52  ;;  %519 = vst.msk [vmem:[#allocation6 + $0x2] sm:$0x1] %vm145_vm3, %v509_v14 }
 0x2dc   :  { %1489 = vmatpush3.bf16.msra.mxu1 %v1674_v13 }
 0x2dd   :  { %520 = vst.msk [vmem:[#allocation6 + $0xa] sm:$0x1] %vm145_vm3, %v516_v15  ;;  %1496 = vmatprep.subr.bf16.mxu1 %v1604_v3 }
 0x3aa   :  { %v590_v17 = vpop.f32.mrb[4].mxu1 }
 0x3ab   :  { %v594_v18 = vadd.f32 %v590_v17, %v521_v16  ;;  %v1381_v19 = vpop.f32.mrb[5].mxu1 }
 0x3ad   :  { %1529 = vtanh.f32 %v594_v18 }
 0x3b7   :  { %v1530_v20 = vpop.eup %1529 }
 0x3b8   :  { %v603_v21 = vrot.slane %v1530_v20, %v1781_v52  ;;  %1391 = vmatmul.mubr.msk.f32.vlgmr.msra.gmra.mrb[8].mxu0 %vm48_vm1, %v1530_v20 }
 0x3b9   :  { %1492 = vmatpush3.bf16.msra.mxu0 %v1664_v10  ;;  %1412 = vmatprep.mubr.msk.f32.mxu0 %vm1605_vm0, %v1606_v6 }
 0x3ba   :  { %v604_v22 = vcombine.high %v603_v21, %v603_v21  ;;  %v611_v23 = vrot.slane %v603_v21, %v1781_v52  ;;  %1493 = vmatprep.subr.bf16.mxu0 %v1604_v3 }
 0x3bc   :  { %v618_v24 = vrot.slane %v604_v22, %v1781_v52  ;;  %621 = vst.msk [vmem:[#allocation6 + $0x3] sm:$0x1] %vm145_vm3, %v611_v23 }
 0x3bd   :  { %1495 = vmatpush3.bf16.msra.mxu0 %v1674_v13 }
 0x3be   :  { %622 = vst.msk [vmem:[#allocation6 + $0xb] sm:$0x1] %vm145_vm3, %v618_v24  ;;  %1502 = vmatprep.subr.bf16.mxu0 %v1604_v3 }
 0x48b   :  { %v692_v26 = vpop.f32.mrb[8].mxu0 }
 0x48c   :  { %v696_v27 = vadd.f32 %v692_v26, %v623_v25  ;;  %v1392_v28 = vpop.f32.mrb[9].mxu0 }
 0x48e   :  { %1531 = vtanh.f32 %v696_v27 }
 0x498   :  { %v1532_v29 = vpop.eup %1531 }
 0x499   :  { %v705_v30 = vrot.slane %v1532_v29, %v1781_v52  ;;  %1402 = vmatmul.mubr.msk.f32.vlgmr.msra.gmra.mrb[6].mxu1 %vm48_vm1, %v1532_v29 }
 0x49a   :  { %1498 = vmatpush3.bf16.msra.mxu1 %v1664_v10  ;;  %1423 = vmatprep.mubr.msk.f32.mxu1 %vm1605_vm0, %v1606_v6 }
 0x49b   :  { %v706_v31 = vcombine.high %v705_v30, %v705_v30  ;;  %v713_v32 = vrot.slane %v705_v30, %v1781_v52  ;;  %1499 = vmatprep.subr.bf16.mxu1 %v1604_v3 }
 0x49d   :  { %v720_v33 = vrot.slane %v706_v31, %v1781_v52  ;;  %723 = vst.msk [vmem:[#allocation6 + $0x4] sm:$0x1] %vm145_vm3, %v713_v32 }
 0x49e   :  { %1501 = vmatpush3.bf16.msra.mxu1 %v1674_v13 }
 0x49f   :  { %724 = vst.msk [vmem:[#allocation6 + $0xc] sm:$0x1] %vm145_vm3, %v720_v33  ;;  %1508 = vmatprep.subr.bf16.mxu1 %v1604_v3 }
 0x56c   :  { %v794_v10 = vpop.f32.mrb[6].mxu1 }
 0x56d   :  { %v798_v35 = vadd.f32 %v794_v10, %v725_v34  ;;  %v1403_v36 = vpop.f32.mrb[7].mxu1 }
 0x56f   :  { %1533 = vtanh.f32 %v798_v35 }
 0x579   :  { %v1534_v37 = vpop.eup %1533 }
 0x57a   :  { %v807_v38 = vrot.slane %v1534_v37, %v1781_v52  ;;  %1413 = vmatmul.mubr.msk.f32.vlgmr.msra.gmra.mrb[10].mxu0 %vm48_vm1, %v1534_v37 }
 0x57b   :  { %1434 = vmatprep.mubr.msk.f32.mxu0 %vm1605_vm0, %v1606_v6  ;;  %1504 = vmatpush3.bf16.msra.mxu0 %v1503_v53 }
 0x57c   :  { %v808_v39 = vcombine.high %v807_v38, %v807_v38  ;;  %v815_v13 = vrot.slane %v807_v38, %v1781_v52  ;;  %1505 = vmatprep.subr.bf16.mxu0 %v1604_v3 }
 0x57e   :  { %v822_v40 = vrot.slane %v808_v39, %v1781_v52  ;;  %825 = vst.msk [vmem:[#allocation6 + $0x5] sm:$0x1] %vm145_vm3, %v815_v13 }
 0x580   :  { %826 = vst.msk [vmem:[#allocation6 + $0xd] sm:$0x1] %vm145_vm3, %v822_v40 }
 0x64d   :  { %v896_v42 = vpop.f32.mrb[10].mxu0 }
 0x64e   :  { %v900_v43 = vadd.f32 %v896_v42, %v827_v41  ;;  %v1414_v44 = vpop.f32.mrb[11].mxu0 }
 0x650   :  { %1535 = vtanh.f32 %v900_v43 }
 0x65a   :  { %v1536_v45 = vpop.eup %1535 }
 0x65b   :  { %v909_v46 = vrot.slane %v1536_v45, %v1781_v52  ;;  %1424 = vmatmul.mubr.msk.f32.vlgmr.msra.gmra.mrb[8].mxu1 %vm48_vm1, %v1536_v45 }
 0x65c   :  { %1445 = vmatprep.mubr.msk.f32.mxu1 %vm1605_vm0, %v1606_v6  ;;  %v35_v6 = vld [vmem:[%s1923_s1 + $0x68] sm:$0xff]  ;;  %1510 = vmatpush3.bf16.msra.mxu1 %v1509_v58 }
 0x65d   :  { %v910_v47 = vcombine.high %v909_v46, %v909_v46  ;;  %v917_v48 = vrot.slane %v909_v46, %v1781_v52  ;;  %v1506_v55 = vpack.c.bf16 %v36_v54, %v35_v6  ;;  %1511 = vmatprep.subr.bf16.mxu1 %v1604_v3  ;;  %v39_v3 = vld [vmem:[%s1923_s1 + $0x88] sm:$0xff] }
 0x65e   :  { %v1512_v7 = vpack.c.bf16 %v40_v5, %v39_v3 }
 0x65f   :  { %v924_v49 = vrot.slane %v910_v47, %v1781_v52  ;;  %927 = vst.msk [vmem:[#allocation6 + $0x6] sm:$0x1] %vm145_vm3, %v917_v48  ;;  %1507 = vmatpush3.bf16.msra.mxu0 %v1506_v55 }
 0x660   :  { %1513 = vmatpush3.bf16.msra.mxu1 %v1512_v7 }
 0x661   :  { %928 = vst.msk [vmem:[#allocation6 + $0xe] sm:$0x1] %vm145_vm3, %v924_v49 }
 0x72e   :  { %v998_v60 = vpop.f32.mrb[8].mxu1 }
 0x72f   :  { %v1002_v61 = vadd.f32 %v998_v60, %v929_v59  ;;  %v1425_v62 = vpop.f32.mrb[9].mxu1 }
 0x731   :  { %1537 = vtanh.f32 %v1002_v61 }
 0x73b   :  { %v1538_v63 = vpop.eup %1537 }
 0x73c   :  { %v1011_v0 = vrot.slane %v1538_v63, %v1781_v52  ;;  %1435 = vmatmul.mubr.msk.f32.vlgmr.msra.gmra.mrb[12].mxu0 %vm48_vm1, %v1538_v63 }
 0x73e   :  { %v1012_v1 = vcombine.high %v1011_v0, %v1011_v0  ;;  %v1019_v2 = vrot.slane %v1011_v0, %v1781_v52 }
 0x740   :  { %v1026_v4 = vrot.slane %v1012_v1, %v1781_v52  ;;  %1029 = vst.msk [vmem:[#allocation6 + $0x7] sm:$0x1] %vm145_vm3, %v1019_v2 }
 0x742   :  { %1030 = vst.msk [vmem:[#allocation6 + $0xf] sm:$0x1] %vm145_vm3, %v1026_v4 }
 0x80f   :  { %v1103_v9 = vpop.f32.mrb[12].mxu0 }
 0x810   :  { %v1104_v52 = vadd.f32 %v1260_v8, %v1103_v9  ;;  %v1436_v11 = vpop.f32.mrb[13].mxu0 }
 0x812   :  { %v1107_v12 = vmax.f32 %v1104_v52, 0.0 }
 0x814   :  { %1446 = vmatmul.mubr.msk.f32.vlgmr.msra.gmra.mrb[10].mxu1 %vm48_vm1, %v1107_v12 }
 0x815   :  { %1564 = shalt.err (!%p1561_p9)
}
 0x816   :  { %s1565_s17 = scalar_lea.hbm %s1925_s3, 256 }
 0x817   :  { %p1566_p10 = scmp.ne.s32.totalorder %s1925_s3, %s1565_s17  ;;  %p1569_p11 = scmp.lt.u32.totalorder %s1565_s17, %s1925_s3 }
 0x819   :  { %p1571_p12 = pnand %p1569_p11, %p1566_p10 }
 0x81b   :  { %1574 = shalt.err (!%p1571_p12)
}
 0x81c   :  { %s1609_s22 = smov 128   ;;  %s1610_s0 = smov 8   ;;  %v1262_v14 = vld [vmem:[%s1924_s2 + $0x2] ss:$0 sm:$0xff]  ;;  %vm1186_vm4 = vcmask 254976  }
 0x81d   :  { %1199 = dma.vmem_to_hbm [thread:$0]  %s1194_s14, 256, %s1925_s3, [#allocation7], %s1609_s22, %s1609_s22, %s1610_s0  }
 0x81e   :  { %s1611_s27 = smov [#allocation8]  }
 0x81f   :  { %s1206_s28 = sshll.u32 %s1611_s27, 4  ;;  %s1207_s28 = int_to_ptr.vmem [resolvable:$true] %s1206_s28 }
 0x820   :  { %s1575_s29 = scalar_lea.vmem %s1207_s28, 32  ;;  %p1580_p0 = scmp.lt.s32.totalorder %s1207_s28, %s1207_s28 }
 0x821   :  { %p1576_p13 = scmp.ne.s32.totalorder %s1207_s28, %s1575_s29  ;;  %p1581_p1 = scmp.lt.s32.totalorder %s1575_s29, %s1575_s29 }
 0x823   :  { %p1582_p2 = por %p1581_p1, %p1580_p0 }
 0x825   :  { %p1583_p3 = pnand %p1582_p2, %p1576_p13 }
 0x8e7   :  { %v1181_v15 = vpop.f32.mrb[10].mxu1 }
 0x8e8   :  { %v1182_v16 = vadd.f32 %v1262_v14, %v1181_v15  ;;  %v1447_v17 = vpop.f32.mrb[11].mxu1 }
 0x8ea   :  { %1539 = vtanh.f32 %v1182_v16 }
 0x8f4   :  { %v1540_v18 = vpop.eup %1539 }
 0x8f5   :  { %1187 = vst.msk [vmem:[#allocation8] sm:$0x3] %vm1186_vm4, %v1540_v18 }
 0x8f6   :  { %1586 = shalt.err (!%p1583_p3)
}
 0x8f7   :  { %s1587_s2 = scalar_lea.hbm %s1926_s4, 32 }
 0x8f8   :  { %p1588_p4 = scmp.ne.s32.totalorder %s1926_s4, %s1587_s2  ;;  %p1591_p5 = scmp.lt.u32.totalorder %s1587_s2, %s1926_s4 }
 0x8fa   :  { %p1593_p6 = pnand %p1591_p5, %p1588_p4 }
 0x8fc   :  { %1596 = shalt.err (!%p1593_p6)
}
 0x8fd   :  { %1209 = dma.vmem_to_hbm [thread:$0]  %s1207_s28, 32, %s1926_s4, [#allocation9]  }
 0x8fe   :  { %1599 = dma.done.wait [#allocation7], 256  }
 0x8ff   :  { %1600 = vsyncadd [#allocation7], 4294967040 }
 0x900   :  { %1601 = dma.done.wait [#allocation9], 32  }
 0x901   :  { %1602 = vsyncadd [#allocation9], 4294967264 }
 0x902   :  { %1216 = vsyncpa [#allocation7], 1 }
 0x903   :  { %1217 = vsyncpa [#allocation9], 1 }

</bundles_post_ra>
